<compile_context>
chip_gen: v5e
topology: v5e:2x2
jax: 0.10.0
libtpu: 0.0.40
codegen_flags: <defaults>
</compile_context>

<pallas_src>
import math
from functools import reduce
from operator import mul

import jax
import jax.numpy as jnp
from jax.experimental import pallas as pl
from jax.experimental.pallas import tpu as pltpu

LANE = 128
ROW_ALIGN = 16  # bf16 packs [16, 128] per vreg; keep batch tiles 16-row aligned


def _round_up(n, m):
    return ((n + m - 1) // m) * m


def _make_mlp_kernel(out_dim):
    """Fused forward for one batch tile: y = relu(x @ W1t + b1) @ W2t + b2, stored true-width."""

    def kernel(x_ref, w1_ref, b1_ref, w2_ref, b2_ref, o_ref):
        x = x_ref[...].astype(jnp.bfloat16)                              # in-kernel f32->bf16 cast
        h = jnp.dot(x, w1_ref[...], preferred_element_type=jnp.float32)  # (tb, Hp) f32 on MXU
        h = jnp.maximum(h + b1_ref[...], 0.0)                            # bias + ReLU (VPU)
        y = jnp.dot(h.astype(w2_ref.dtype), w2_ref[...],
                    preferred_element_type=jnp.float32) + b2_ref[...]    # (tb, Op) f32
        o_ref[...] = y[:, :out_dim]                                      # store only true O lanes

    return kernel


def init_linear_params(key, num_in, num_out):
    """nn.Linear default init: U(-1/sqrt(fan_in), 1/sqrt(fan_in)) for weight and bias."""
    kw, kb = jax.random.split(key)
    bound = 1.0 / math.sqrt(num_in)
    w = jax.random.uniform(kw, (num_out, num_in), jnp.float32, -bound, bound)
    b = jax.random.uniform(kb, (num_out,), jnp.float32, -bound, bound)
    return w, b


def make_mlp_params(key, num_agents, num_actions, num_hidden, num_atoms):
    in1 = num_agents * num_actions * num_atoms
    out1 = num_agents * num_hidden
    out2 = num_actions * num_atoms
    k1, k2 = jax.random.split(key)
    # MLP passes num_agents=1 to Linear, so no inter-agent zero-mask applies to fc1/fc2.
    # TODO(synk): the Linear backward gradient-masking hook is training-only; no forward equivalent.
    return {"fc1": init_linear_params(k1, in1, out1),
            "fc2": init_linear_params(k2, out1, out2)}


def prepare_mlp_params(params):
    """One-time weight prep (do NOT call per forward): transpose to (in, out), zero-pad the
    hidden/output widths up to multiples of 128 lanes (matmul-side only), cast weights to bf16."""
    w1, b1 = params["fc1"]          # (H, In), (H,)
    w2, b2 = params["fc2"]          # (O, H), (O,)
    num_in = w1.shape[1]
    H = w1.shape[0]
    O = w2.shape[0]
    Hp = _round_up(H, LANE)
    Op = _round_up(O, LANE)

    w1t = jnp.zeros((num_in, Hp), jnp.float32).at[:, :H].set(w1.T)
    b1p = jnp.zeros((1, Hp), jnp.float32).at[:, :H].set(b1)
    w2t = jnp.zeros((Hp, Op), jnp.float32).at[:H, :O].set(w2.T)
    b2p = jnp.zeros((1, Op), jnp.float32).at[:, :O].set(b2)

    return {
        "w1t": w1t.astype(jnp.bfloat16),
        "b1": b1p,                                  # biases stay f32 (post-accumulation add)
        "w2t": w2t.astype(jnp.bfloat16),
        "b2": b2p,
        "num_in": num_in,
        "out_dim": O,
        "hidden_padded": Hp,
        "out_padded": Op,
    }


def _choose_batch_tile(B, batch_tile):
    """Pick batch tile: >=2 grid steps when possible (v7x megacore), 16-row aligned, minimal
    overshoot past B (never ~2x like the old min(round_up(B), cap) rule)."""
    batch_tile = max(ROW_ALIGN, _round_up(batch_tile, ROW_ALIGN))
    if B <= ROW_ALIGN:
        return B                                     # single block == full array (always legal)
    n_steps = max(2, pl.cdiv(B, batch_tile))
    tb = _round_up(pl.cdiv(B, n_steps), ROW_ALIGN)
    return min(tb, batch_tile)


def mlp_forward(prepped, x, *, num_actions, num_atoms, batch_tile=4096):
    """x: (*, agents, actions, atoms) float32/bfloat16 -> (*, actions, atoms) float32."""
    lead_shape = x.shape[:-3]
    num_in = prepped["num_in"]
    Hp = prepped["hidden_padded"]
    Op = prepped["out_padded"]
    O = prepped["out_dim"]

    B = int(reduce(mul, lead_shape, 1))
    xf = x.reshape(B, num_in)                        # view; dtype cast happens inside the kernel

    tb = _choose_batch_tile(B, batch_tile)
    grid = (pl.cdiv(B, tb),)                         # boundary block is masked by Pallas

    out = pl.pallas_call(
        _make_mlp_kernel(O),
        out_shape=jax.ShapeDtypeStruct((B, O), jnp.float32),
        grid=grid,
        in_specs=[
            pl.BlockSpec((tb, num_in), lambda i: (i, 0)),   # x: streamed over batch
            pl.BlockSpec((num_in, Hp), lambda i: (0, 0)),   # weights/biases resident across grid
            pl.BlockSpec((1, Hp), lambda i: (0, 0)),
            pl.BlockSpec((Hp, Op), lambda i: (0, 0)),
            pl.BlockSpec((1, Op), lambda i: (0, 0)),
        ],
        out_specs=pl.BlockSpec((tb, O), lambda i: (i, 0)),  # true-width (lane-masked) output
        compiler_params=pltpu.CompilerParams(
            dimension_semantics=("parallel",)),
    )(xf, prepped["w1t"], prepped["b1"], prepped["w2t"], prepped["b2"])

    return out.reshape(lead_shape + (num_actions, num_atoms))   # pure view, no slice


def reference_forward(params, x, *, num_actions, num_atoms):
    """Pure-JAX f32 reference matching the PyTorch MLP forward exactly."""
    lead_shape = x.shape[:-3]
    w1, b1 = params["fc1"]
    w2, b2 = params["fc2"]
    B = int(reduce(mul, lead_shape, 1))
    xf = x.reshape(B, -1).astype(jnp.float32)
    h = jax.nn.relu(xf @ w1.T + b1)
    y = h @ w2.T + b2
    return y.reshape(lead_shape + (num_actions, num_atoms))


if __name__ == "__main__":
    num_agents = 2
    num_actions = 4
    num_atoms = 8
    num_hidden = 32

    key = jax.random.PRNGKey(0)
    pkey, xkey, xkey2 = jax.random.split(key, 3)
    params = make_mlp_params(pkey, num_agents, num_actions, num_hidden, num_atoms)
    prepped = prepare_mlp_params(params)   # one-time transpose / pad / bf16 cast

    # Small primary check: batch=2, single full-array block.
    x = jax.random.normal(
        xkey, (2, num_agents, num_actions, num_atoms), dtype=jnp.float32)
    q = mlp_forward(prepped, x, num_actions=num_actions, num_atoms=num_atoms)
    q = jax.block_until_ready(q)
    q_ref = reference_forward(params, x, num_actions=num_actions, num_atoms=num_atoms)
    assert q.shape == (2, num_actions, num_atoms), q.shape
    # bf16 inputs / f32 accumulation: expected error ~4e-3 at these fan-ins
    assert jnp.allclose(q, q_ref, atol=2e-2, rtol=2e-2), float(jnp.max(jnp.abs(q - q_ref)))

    # Secondary check: uneven flattened batch (B=21) exercises the cdiv grid + boundary masking.
    x2 = jax.random.normal(
        xkey2, (3, 7, num_agents, num_actions, num_atoms), dtype=jnp.float32)
    q2 = mlp_forward(prepped, x2, num_actions=num_actions, num_atoms=num_atoms, batch_tile=4096)
    q2 = jax.block_until_ready(q2)
    q2_ref = reference_forward(params, x2, num_actions=num_actions, num_atoms=num_atoms)
    assert q2.shape == (3, 7, num_actions, num_atoms), q2.shape
    assert jnp.allclose(q2, q2_ref, atol=2e-2, rtol=2e-2), float(jnp.max(jnp.abs(q2 - q2_ref)))

    print("KERNEL_OK")
</pallas_src>

<mosaic_0001>
module attributes {stable_mosaic.version = 11 : i64} {
  func.func @kernel(%arg0: i32, %arg1: memref<2x64xf32, #tpu.memory_space<vmem>>, %arg2: memref<64x128xbf16, #tpu.memory_space<vmem>>, %arg3: memref<1x128xf32, #tpu.memory_space<vmem>>, %arg4: memref<128x128xbf16, #tpu.memory_space<vmem>>, %arg5: memref<1x128xf32, #tpu.memory_space<vmem>>, %arg6: memref<2x32xf32, #tpu.memory_space<vmem>>) attributes {dimension_semantics = [#tpu.dimension_semantics<parallel>], iteration_bounds = array<i64: 1>, scalar_prefetch = 0 : i64, scratch_operands = 0 : i64, tpu.core_type = #tpu.core_type<tc>, window_params = [{transform_indices = @transform_0, window_bounds = array<i64: 2, 64>}, {pipeline_mode = #tpu.pipeline_mode<synchronous>, transform_indices = @transform_1, window_bounds = array<i64: 64, 128>}, {pipeline_mode = #tpu.pipeline_mode<synchronous>, transform_indices = @transform_2, window_bounds = array<i64: 1, 128>}, {pipeline_mode = #tpu.pipeline_mode<synchronous>, transform_indices = @transform_3, window_bounds = array<i64: 128, 128>}, {pipeline_mode = #tpu.pipeline_mode<synchronous>, transform_indices = @transform_4, window_bounds = array<i64: 1, 128>}, {transform_indices = @transform_5, window_bounds = array<i64: 2, 32>}]} {
    %c0 = arith.constant 0 : index
    %c0_0 = arith.constant 0 : index
    %0 = vector.load %arg1[%c0, %c0_0] : memref<2x64xf32, #tpu.memory_space<vmem>>, vector<2x64xf32>
    %1 = arith.truncf %0 : vector<2x64xf32> to vector<2x64xbf16>
    %c0_1 = arith.constant 0 : index
    %c0_2 = arith.constant 0 : index
    %2 = vector.load %arg2[%c0_1, %c0_2] : memref<64x128xbf16, #tpu.memory_space<vmem>>, vector<64x128xbf16>
    %cst = arith.constant dense<0.000000e+00> : vector<2x128xf32>
    %3 = tpu.matmul %1, %2, %cst {dimension_numbers = #tpu.dot_dimension_numbers<[1], [0], [0], [1], [0, 0, 1, 1], [], []>} : vector<2x64xbf16>, vector<64x128xbf16>, vector<2x128xf32> -> vector<2x128xf32>
    %c0_3 = arith.constant 0 : index
    %c0_4 = arith.constant 0 : index
    %4 = vector.load %arg3[%c0_3, %c0_4] : memref<1x128xf32, #tpu.memory_space<vmem>>, vector<1x128xf32>
    %5 = vector.broadcast %4 : vector<1x128xf32> to vector<2x128xf32>
    %6 = arith.addf %3, %5 : vector<2x128xf32>
    %cst_5 = arith.constant 0.000000e+00 : f32
    %7 = vector.broadcast %cst_5 : f32 to vector<2x128xf32>
    %8 = arith.maximumf %6, %7 : vector<2x128xf32>
    %9 = arith.truncf %8 : vector<2x128xf32> to vector<2x128xbf16>
    %c0_6 = arith.constant 0 : index
    %c0_7 = arith.constant 0 : index
    %10 = vector.load %arg4[%c0_6, %c0_7] : memref<128x128xbf16, #tpu.memory_space<vmem>>, vector<128x128xbf16>
    %cst_8 = arith.constant dense<0.000000e+00> : vector<2x128xf32>
    %11 = tpu.matmul %9, %10, %cst_8 {dimension_numbers = #tpu.dot_dimension_numbers<[1], [0], [0], [1], [0, 0, 1, 1], [], []>} : vector<2x128xbf16>, vector<128x128xbf16>, vector<2x128xf32> -> vector<2x128xf32>
    %c0_9 = arith.constant 0 : index
    %c0_10 = arith.constant 0 : index
    %12 = vector.load %arg5[%c0_9, %c0_10] : memref<1x128xf32, #tpu.memory_space<vmem>>, vector<1x128xf32>
    %13 = vector.broadcast %12 : vector<1x128xf32> to vector<2x128xf32>
    %14 = arith.addf %11, %13 : vector<2x128xf32>
    %15 = vector.extract_strided_slice %14 {offsets = [0, 0], sizes = [2, 32], strides = [1, 1]} : vector<2x128xf32> to vector<2x32xf32>
    %c0_11 = arith.constant 0 : index
    %c0_12 = arith.constant 0 : index
    %16 = vector.load %arg6[%c0_11, %c0_12] : memref<2x32xf32, #tpu.memory_space<vmem>>, vector<2x32xf32>
    tpu.vector_store %arg6[%c0_11, %c0_12], %15 {strides = array<i32>} : memref<2x32xf32, #tpu.memory_space<vmem>>, vector<2x32xf32>,
    return
  }
  func.func @transform_0(%arg0: i32) -> (i32, i32) {
    %c0_i32 = arith.constant 0 : i32
    %c0_i32_0 = arith.constant 0 : i32
    return %arg0, %c0_i32 : i32, i32
  }
  func.func @transform_1(%arg0: i32) -> (i32, i32) {
    %c0_i32 = arith.constant 0 : i32
    %c0_i32_0 = arith.constant 0 : i32
    %c0_i32_1 = arith.constant 0 : i32
    return %c0_i32, %c0_i32_0 : i32, i32
  }
  func.func @transform_2(%arg0: i32) -> (i32, i32) {
    %c0_i32 = arith.constant 0 : i32
    %c0_i32_0 = arith.constant 0 : i32
    %c0_i32_1 = arith.constant 0 : i32
    return %c0_i32, %c0_i32_0 : i32, i32
  }
  func.func @transform_3(%arg0: i32) -> (i32, i32) {
    %c0_i32 = arith.constant 0 : i32
    %c0_i32_0 = arith.constant 0 : i32
    %c0_i32_1 = arith.constant 0 : i32
    return %c0_i32, %c0_i32_0 : i32, i32
  }
  func.func @transform_4(%arg0: i32) -> (i32, i32) {
    %c0_i32 = arith.constant 0 : i32
    %c0_i32_0 = arith.constant 0 : i32
    %c0_i32_1 = arith.constant 0 : i32
    return %c0_i32, %c0_i32_0 : i32, i32
  }
  func.func @transform_5(%arg0: i32) -> (i32, i32) {
    %c0_i32 = arith.constant 0 : i32
    %c0_i32_0 = arith.constant 0 : i32
    return %arg0, %c0_i32 : i32, i32
  }
}

</mosaic_0001>

<bundles_post_ra>
// kernel: tpu_custom_call.1
= control target key start
LH: loop header
LB: loop body
LE: loop exit
PB: predicated region body
PF: predicated region fallthrough
CT: control target
= control target key end

     0   :  { %10 = vsyncpa [#allocation3], 0  ;;  %s450_s0 = inlined_call_operand.hbm [shape: f32[2,64], index: 0, kind: input, shape index: {}]   ;;  %s451_s1 = inlined_call_operand.hbm [shape: bf16[64,128], index: 1, kind: input, shape index: {}]   ;;  %s452_s2 = inlined_call_operand.vmem [shape: f32[1,128], index: 2, kind: input, shape index: {}]   ;;  %s453_s3 = inlined_call_operand.hbm [shape: bf16[128,128], index: 3, kind: input, shape index: {}]   ;;  %s454_s4 = inlined_call_operand.vmem [shape: f32[1,128], index: 4, kind: input, shape index: {}]   ;;  %s455_s5 = inlined_call_operand.hbm [shape: f32[2,32], index: 5, kind: output, shape index: {}]  }
   0x1   :  { %11 = vsyncpa [#allocation6], 0  ;;  %s28_s20 = sshll.u32 %s451_s1, 4  ;;  %s29_s20 = int_to_ptr.hbm [resolvable:$true] %s28_s20 }
   0x2   :  { %12 = vsyncpa [#allocation4], 0  ;;  %s396_s21 = smov [#allocation5]   ;;  %s18_s25 = sshll.u32 %s450_s0, 4  ;;  %s19_s25 = int_to_ptr.hbm [resolvable:$true] %s18_s25 }
   0x3   :  { %s30_s22 = sshll.u32 %s396_s21, 4  ;;  %s397_s26 = smov 64   ;;  %s31_s22 = int_to_ptr.vmem [resolvable:$true] %s30_s22 }
   0x4   :  { %s398_s27 = smov 4   ;;  %s399_s28 = smov [#allocation2]  }
   0x5   :  { %36 = dma.hbm_to_vmem [thread:$0]  %s29_s20, 512, %s31_s22, [#allocation6], %s397_s26, %s397_s26, %s398_s27  }
   0x6   :  { %s20_s29 = sshll.u32 %s399_s28, 4  ;;  %s43_s7 = sshll.u32 %s453_s3, 4  ;;  %s21_s29 = int_to_ptr.vmem [resolvable:$true] %s20_s29  ;;  %s44_s7 = int_to_ptr.hbm [resolvable:$true] %s43_s7 }
   0x7   :  { %23 = dma.hbm_to_vmem [thread:$0]  %s19_s25, 32, %s21_s29, [#allocation3]  }
   0x8   :  { %s400_s1 = smov [#allocation7]  }
   0x9   :  { %s45_s8 = sshll.u32 %s400_s1, 4  ;;  %s46_s8 = int_to_ptr.vmem [resolvable:$true] %s45_s8 }
   0xa   :  { %51 = dma.hbm_to_vmem [thread:$0]  %s44_s7, 1024, %s46_s8, [#allocation6], %s397_s26, %s397_s26, %s398_s27  }
   0xb   :  { %390 = dma.done.wait [#allocation3], 32  }
   0xc   :  { %391 = vsyncadd [#allocation3], 4294967264 }
   0xd   :  { %392 = dma.done.wait [#allocation6], 1536  }
   0xe   :  { %393 = vsyncadd [#allocation6], 4294965760  ;;  %v277_v0 = vld [vmem:[#allocation5 + $0x18] sm:$0xff]  ;;  %v276_v2 = vld [vmem:[#allocation5 + $0x10] sm:$0xff]  ;;  %vm105_vm0 = vcmask 523264   ;;  %s401_s11 = smov [#allocation8]  }
   0xf   :  { %v285_v1 = vld [vmem:[#allocation7 + $0x38] sm:$0xff]  ;;  %113 = vmatpush.bf16.msra.mxu0 %v277_v0  ;;  %v284_v3 = vld [vmem:[#allocation7 + $0x30] sm:$0xff]  ;;  %v275_v4 = vld [vmem:[#allocation5 + $0x8] sm:$0xff]  ;;  %s212_s12 = sshll.u32 %s401_s11, 4  ;;  %s214_s15 = sshll.u32 %s455_s5, 4  ;;  %vm205_vm1 = vcmask 254976   ;;  %s213_s12 = int_to_ptr.vmem [resolvable:$true] %s212_s12  ;;  %s215_s15 = int_to_ptr.hbm [resolvable:$true] %s214_s15 }
  0x10   :  { %192 = vmatpush.bf16.msra.mxu1 %v285_v1  ;;  %v283_v5 = vld [vmem:[#allocation7 + $0x28] sm:$0xff]  ;;  %v274_v6 = vld [vmem:[#allocation5] sm:$0xff]  ;;  %v67_v7 = vld [vmem:[#allocation2] sm:$0x3] }
  0x11   :  { %v282_v8 = vld [vmem:[#allocation7 + $0x20] sm:$0xff]  ;;  %v68_v9 = vpack.c.bf16 %v67_v7, %v67_v7  ;;  %v281_v10 = vld [vmem:[#allocation7 + $0x18] sm:$0xff]  ;;  %v280_v11 = vld [vmem:[#allocation7 + $0x10] sm:$0xff] }
  0x12   :  { %v279_v12 = vld [vmem:[#allocation7 + $0x8] sm:$0xff]  ;;  %v278_v13 = vld [vmem:[#allocation7] sm:$0xff]  ;;  %v292_v14 = vld [vmem:[%s452_s2] ss:$0 sm:$0xff] }
  0x13   :  { %114 = vmatpush.bf16.msra.mxu0 %v276_v2  ;;  %v293_v20 = vld [vmem:[%s454_s4] ss:$0 sm:$0xff] }
  0x14   :  { %193 = vmatpush.bf16.msra.mxu1 %v284_v3 }
  0x17   :  { %115 = vmatpush.bf16.msra.mxu0 %v275_v4 }
  0x18   :  { %194 = vmatpush.bf16.msra.mxu1 %v283_v5 }
  0x1b   :  { %116 = vmatpush.bf16.msra.mxu0 %v274_v6 }
  0x1c   :  { %195 = vmatpush.bf16.msra.mxu1 %v282_v8 }
  0x1e   :  { %241 = vmatmul.msk.bf16.vlgmr.msra.gmra.mxu0 %vm105_vm0, %v68_v9 }
  0x20   :  { %196 = vmatpush.bf16.msra.mxu1 %v281_v10 }
  0x24   :  { %197 = vmatpush.bf16.msra.mxu1 %v280_v11 }
  0x28   :  { %198 = vmatpush.bf16.msra.mxu1 %v279_v12 }
  0x2c   :  { %199 = vmatpush.bf16.msra.mxu1 %v278_v13 }
  0x9b   :  { %v118_v15 = vpop.f32.mrf.mxu0 }
  0x9c   :  { %v119_v16 = vadd.f32 %v292_v14, %v118_v15 }
  0x9e   :  { %v122_v17 = vmax.f32 %v119_v16, 0.0 }
  0xa0   :  { %v123_v18 = vpack.c.bf16 %v122_v17, %v122_v17 }
  0xa2   :  { %200 = vmatmul.bf16.vlgmr.msra.gmra.mxu1 %v123_v18 }
  0xa3   :  { %v120_v19 = vpop.f32.mrf.mxu0 }
 0x11f   :  { %v201_v21 = vpop.f32.mrf.mxu1 }
 0x120   :  { %v202_v22 = vadd.f32 %v293_v20, %v201_v21 }
 0x122   :  { %206 = vst.msk [vmem:[#allocation8] sm:$0x3] %vm205_vm1, %v202_v22 }
 0x123   :  { %217 = dma.vmem_to_hbm [thread:$0]  %s213_s12, 32, %s215_s15, [#allocation4]  }
 0x127   :  { %v203_v23 = vpop.f32.mrf.mxu1 }
 0x128   :  { %394 = dma.done.wait [#allocation4], 32  }
 0x129   :  { %395 = vsyncadd [#allocation4], 4294967264 }
 0x12a   :  { %222 = vsyncpa [#allocation3], 1 }
 0x12b   :  { %223 = vsyncpa [#allocation6], 1 }
 0x12c   :  { %224 = vsyncpa [#allocation4], 1 }

</bundles_post_ra>
